<compile_context>
chip_gen: v7x
topology: tpu7x:2x2x1
jax: 0.10.0
libtpu: 0.0.40
codegen_flags: <defaults>
</compile_context>

<pallas_src>
import jax
import jax.numpy as jnp
from jax import lax
from jax.experimental import pallas as pl
from jax.experimental.pallas import tpu as pltpu


def _gconv_kernel(x_ref, a_ref, o_ref):
    # x_ref: (Bn, V, C), a_ref: (Bn, V, W), o_ref: (Bn, W, C)
    x = x_ref[...]
    a = a_ref[...]
    # out[b, w, c] = sum_v a[b, v, w] * x[b, v, c]
    out = lax.dot_general(
        a, x,
        dimension_numbers=(((1,), (1,)), ((0,), (0,))),
        preferred_element_type=jnp.float32,
    )  # (Bn, W, C)
    o_ref[...] = out.astype(o_ref.dtype)


def _round_up(x, m):
    return -(-x // m) * m


def _padded_tile_bytes(rows, cols, itemsize):
    # VMEM tiles pad the second-to-last dim to 8 and the last dim to 128.
    return _round_up(rows, 8) * _round_up(cols, 128) * itemsize


def _choose_block_batch(N, V, W, C, itemsize,
                        max_bn=64,
                        vmem_block_budget_bytes=4 * 1024 * 1024):
    """Pick how many batches to process per grid step."""
    per_batch_padded = (_padded_tile_bytes(V, C, itemsize)
                        + _padded_tile_bytes(V, W, itemsize)
                        + _padded_tile_bytes(W, C, itemsize))
    # x, A, out blocks are each double-buffered by the pipeline -> ~2x peak.
    bn = max(1, vmem_block_budget_bytes // (2 * per_batch_padded))
    bn = min(bn, max_bn, N)
    if N >= 2:
        # Keep at least 2 grid steps so v7x's two TensorCores both get work.
        bn = min(bn, -(-N // 2))
    return int(bn)


def gconv_rnn(x, A):
    """JAX/Pallas equivalent of gconv_RNN.forward(x, A).

    x: (N, V, C), A: (N, V, W) -> (N, W, C)
    """
    N, V, C = x.shape
    N2, V2, W = A.shape
    assert N == N2 and V == V2, "x and A must share batch and node dimensions"

    out_dtype = jnp.promote_types(x.dtype, A.dtype)
    x = x.astype(out_dtype)
    A = A.astype(out_dtype)
    itemsize = jnp.dtype(out_dtype).itemsize

    bn = _choose_block_batch(N, V, W, C, itemsize)
    grid = (pl.cdiv(N, bn),)

    cost = pl.CostEstimate(
        flops=2 * N * V * W * C,
        transcendentals=0,
        bytes_accessed=itemsize * (N * V * C + N * V * W + N * W * C),
    )

    return pl.pallas_call(
        _gconv_kernel,
        out_shape=jax.ShapeDtypeStruct((N, W, C), out_dtype),
        grid_spec=pltpu.PrefetchScalarGridSpec(
            num_scalar_prefetch=0,
            grid=grid,
            in_specs=[
                pl.BlockSpec((bn, V, C), lambda n: (n, 0, 0)),
                pl.BlockSpec((bn, V, W), lambda n: (n, 0, 0)),
            ],
            out_specs=pl.BlockSpec((bn, W, C), lambda n: (n, 0, 0)),
        ),
        compiler_params=pltpu.CompilerParams(
            dimension_semantics=("parallel",),
            vmem_limit_bytes=32 * 1024 * 1024,
        ),
        cost_estimate=cost,
    )(x, A)


def _reference(x, A):
    # Pure-JAX reference of torch.einsum('nvc,nvw->nwc', x, A)
    return jnp.einsum('nvc,nvw->nwc', x, A)


if __name__ == "__main__":
    key = jax.random.PRNGKey(0)
    kx, ka = jax.random.split(key)

    # Small shapes consistent with the module: batch=8, nodes=16, channels=32.
    N, V, W, C = 8, 16, 16, 32
    x = jax.random.normal(kx, (N, V, C), dtype=jnp.float32)
    A = jax.random.normal(ka, (N, V, W), dtype=jnp.float32)

    out = gconv_rnn(x, A)
    jax.block_until_ready(out)

    ref = _reference(x, A)
    assert out.shape == (N, W, C)
    assert jnp.allclose(out, ref, atol=1e-5, rtol=1e-5), "mismatch vs reference"

    print("KERNEL_OK")
</pallas_src>

<mosaic_0001>
module attributes {stable_mosaic.version = 11 : i64} {
  func.func @_gconv_kernel(%arg0: i32, %arg1: memref<4x16x32xf32, #tpu.memory_space<vmem>>, %arg2: memref<4x16x16xf32, #tpu.memory_space<vmem>>, %arg3: memref<4x16x32xf32, #tpu.memory_space<vmem>>) attributes {dimension_semantics = [#tpu.dimension_semantics<parallel>], iteration_bounds = array<i64: 2>, scalar_prefetch = 0 : i64, scratch_operands = 0 : i64, tpu.core_type = #tpu.core_type<tc>, window_params = [{transform_indices = @transform_0, window_bounds = array<i64: 4, 16, 32>}, {transform_indices = @transform_1, window_bounds = array<i64: 4, 16, 16>}, {transform_indices = @transform_2, window_bounds = array<i64: 4, 16, 32>}]} {
    %c0 = arith.constant 0 : index
    %c0_0 = arith.constant 0 : index
    %c0_1 = arith.constant 0 : index
    %0 = vector.load %arg1[%c0, %c0_0, %c0_1] : memref<4x16x32xf32, #tpu.memory_space<vmem>>, vector<4x16x32xf32>
    %c0_2 = arith.constant 0 : index
    %c0_3 = arith.constant 0 : index
    %c0_4 = arith.constant 0 : index
    %1 = vector.load %arg2[%c0_2, %c0_3, %c0_4] : memref<4x16x16xf32, #tpu.memory_space<vmem>>, vector<4x16x16xf32>
    %cst = arith.constant dense<0.000000e+00> : vector<4x16x32xf32>
    %2 = tpu.matmul %1, %0, %cst {dimension_numbers = #tpu.dot_dimension_numbers<[1], [1], [2], [2], [0, 0, 0, 2, 1, 2], [0], [0]>} : vector<4x16x16xf32>, vector<4x16x32xf32>, vector<4x16x32xf32> -> vector<4x16x32xf32>
    %c0_5 = arith.constant 0 : index
    %c0_6 = arith.constant 0 : index
    %c0_7 = arith.constant 0 : index
    %3 = vector.load %arg3[%c0_5, %c0_6, %c0_7] : memref<4x16x32xf32, #tpu.memory_space<vmem>>, vector<4x16x32xf32>
    tpu.vector_store %arg3[%c0_5, %c0_6, %c0_7], %2 {strides = array<i32>} : memref<4x16x32xf32, #tpu.memory_space<vmem>>, vector<4x16x32xf32>,
    return
  }
  func.func @transform_0(%arg0: i32) -> (i32, i32, i32) {
    %c0_i32 = arith.constant 0 : i32
    %c0_i32_0 = arith.constant 0 : i32
    %c0_i32_1 = arith.constant 0 : i32
    return %arg0, %c0_i32, %c0_i32_0 : i32, i32, i32
  }
  func.func @transform_1(%arg0: i32) -> (i32, i32, i32) {
    %c0_i32 = arith.constant 0 : i32
    %c0_i32_0 = arith.constant 0 : i32
    %c0_i32_1 = arith.constant 0 : i32
    return %arg0, %c0_i32, %c0_i32_0 : i32, i32, i32
  }
  func.func @transform_2(%arg0: i32) -> (i32, i32, i32) {
    %c0_i32 = arith.constant 0 : i32
    %c0_i32_0 = arith.constant 0 : i32
    %c0_i32_1 = arith.constant 0 : i32
    return %arg0, %c0_i32, %c0_i32_0 : i32, i32, i32
  }
}

</mosaic_0001>

<bundles_post_ra>
// kernel: tpu_custom_call.1
= control target key start
LH: loop header
LB: loop body
LE: loop exit
PB: predicated region body
PF: predicated region fallthrough
CT: control target
= control target key end

     0   :  { %7 = vsyncpa [#allocation3], 0  ;;  %s1365_s0 = inlined_call_operand.hbm [shape: f32[8,16,32], index: 0, kind: input, shape index: {}]   ;;  %s1366_s1 = inlined_call_operand.hbm [shape: f32[8,16,16], index: 1, kind: input, shape index: {}]   ;;  %s1367_s2 = inlined_call_operand.hbm [shape: f32[8,16,32], index: 2, kind: output, shape index: {}]  }
   0x1   :  { %9 = vsyncpa [#allocation3 + $0x1], 0 }
   0x2   :  { %10 = vsyncpa [#allocation6], 0 }
   0x3   :  { %12 = vsyncpa [#allocation6 + $0x1], 0 }
   0x4   :  { %13 = vsyncpa [#allocation4], 0 }
   0x5   :  { %15 = vsyncpa [#allocation4 + $0x1], 0  ;;  %s1101_s9 = smov 0   ;;  %s1103_s10 = smov 0  }
   0x6   :  { %s1105_s11 = smov 0   ;;  %s1107_s12 = smov 0  }
   0x7 LB: > { %s1122_s13 = sadd.s32 4294967295, %s1077_s12   ;;  %s796_s14 = sadd.s32 4294967294, %s1077_s12   ;;  %s1077_s12 = sphi %s1107_s12, %s1383_s12   ;;  %s1073_s11 = sphi %s1105_s11, %s1382_s11   ;;  %s1069_s10 = sphi %s1103_s10, %s1381_s10   ;;  %s1065_s9 = sphi %s1101_s9, %s1380_s9  }
   0x8   : > { %s1126_s15 = sadd.s32 1, %s1077_s12   ;;  %s28_s16 = sadd.s32 1, %s1073_s11 }
   0x9   : > { %s25_s17 = ssub.s32 %s1077_s12, %s1126_s15  ;;  %p35_p0 = scmp.ne.s32.totalorder %s1073_s11, %s1069_s10 }
   0xa   : > { %p26_p1 = scmp.eq.s32.totalorder %s25_s17, 0  ;;  %p36_p2 = scmp.eq.s32.totalorder %s1077_s12, 0 }
   0xb   : > { %p41_p3 = scmp.ne.s32.totalorder %s1069_s10, %s1065_s9  ;;  %p42_p4 = scmp.eq.s32.totalorder %s1122_s13, 0 }
   0xc   : > { %s1138_s18 = scalar_select %p26_p1, %s1073_s11, %s28_s16  }
   0xd   : > { %p1140_p5 = por %p36_p2, %p35_p0  ;;  %p1144_p6 = por %p42_p4, %p41_p3 }
   0xe   : > { %p91_p7 = scmp.eq.s32.totalorder %s1122_s13, 1  ;;  %p97_p8 = scmp.eq.s32.totalorder %s796_s14, 1 }
   0xf   : > { %s1371_s20 = scalar_select %p1144_p6, 1, 0 }
  0x10   : > { %p908_p10 = scmp.lt.s32.totalorder %s1077_s12, 2  ;;  %p1151_p11 = por %p91_p7, %p35_p0 }
  0x11   : > { %p1155_p12 = por %p97_p8, %p41_p3  ;;  %s1160_s23 = sand.u32 1, %s1073_s11  }
  0x12   : > { %s1372_s21 = scalar_select %p1151_p11, 1, 0 }
  0x13   : > { %s1373_s22 = scalar_select %p1155_p12, 1, 0 }
  0x14   : > { %s826_s24 = sshll.u32 %s1077_s12, 10  ;;  %s799_s25 = sshll.u32 %s1160_s23, 6 }
  0x15   : > { %s1169_s28 = scalar_lea.hbm %s1365_s0, %s826_s24  ;;  %s121_s29 = scalar_lea.vmem [#allocation2], %s799_s25 }
  0x16   : > { %s129_s30 = sshll.u32 %s121_s29, 4  ;;  %p1175_p13 = pnand %p908_p10, %p1140_p5  ;;  %s1179_s30 = int_to_ptr.vmem [resolvable:$true] %s129_s30 }
  0x17   : > { %s118_s4 = scalar_lea.sflag [#allocation3], %s1160_s23  ;;  %s947_s5 = scalar_lea.hbm %s1169_s28, 1024 }
  0x18   : > { %p948_p0 = scmp.ne.s32.totalorder %s1169_s28, %s947_s5  ;;  %p949_p1 = pneg %p1175_p13 }
  0x19   : > { %s952_s8 = scalar_lea.hbm %s1365_s0, 2048  ;;  %p953_p4 = scmp.lt.u32.totalorder %s1169_s28, %s1365_s0 }
  0x1a   : > { %p950_p2 = pnand %p949_p1, %p948_p0  ;;  %p954_p5 = scmp.lt.u32.totalorder %s952_s8, %s947_s5 }
  0x1b   : > { %p956_p8 = scmp.lt.u32.totalorder %s947_s5, %s1169_s28 }
  0x1c   : > { %p951_p3 = pneg %p950_p2  ;;  %p955_p7 = por %p954_p5, %p953_p4 }
  0x1e   : > { %p957_p10 = por %p956_p8, %p955_p7 }
  0x20   : > { %p958_p9 = pnand %p957_p10, %p951_p3 }
  0x22   : > { %961 = shalt.err (!%p958_p9)
}
  0x23   : > { %s962_s17 = scalar_lea.vmem %s1179_s30, 1024  ;;  %s1079_s19 = smov [#allocation2]  }
  0x24   : > { %p963_p0 = scmp.ne.s32.totalorder %s1179_s30, %s962_s17  ;;  %s967_s26 = sshll.u32 %s1079_s19, 4  ;;  %s968_s26 = int_to_ptr.vmem [resolvable:$false] %s967_s26 }
  0x25   : > { %s969_s27 = scalar_lea.vmem %s968_s26, 2048  ;;  %p970_p11 = scmp.lt.s32.totalorder %s1179_s30, %s968_s26 }
  0x26   : > { %p965_p2 = pnand %p963_p0, %p949_p1  ;;  %p971_p4 = scmp.lt.s32.totalorder %s969_s27, %s962_s17 }
  0x28   : > { %p966_p12 = pneg %p965_p2  ;;  %p972_p5 = por %p971_p4, %p970_p11 }
  0x2a   : > { %p973_p7 = pnand %p972_p5, %p966_p12 }
  0x2c   : > { %976 = shalt.err (!%p973_p7)
}
  0x2d   : > { %s1080_s29 = smov 128   ;;  %s1081_s5 = smov 8  }
  0x2e   : > { %900 = dma.hbm_to_vmem [thread:$0]  (!%p1175_p13), %s1169_s28, 1024, %s1179_s30, %s118_s4, %s1080_s29, %s1080_s29, %s1081_s5  }
  0x2f   : > { %p807_p9 = scmp.ge.s32.totalorder %s1077_s12, 1  ;;  %p159_p11 = scmp.lt.s32.totalorder %s1077_s12, 3 }
  0x30   : > { %s1223_s14 = scalar_lea.hbm %s1366_s1, %s826_s24  ;;  %s143_s16 = scalar_lea.vmem [#allocation5], %s799_s25 }
  0x31   : > { %p1214_p12 = pnand %p807_p9, %p159_p11  ;;  %s151_s17 = sshll.u32 %s143_s16, 4  ;;  %s1227_s17 = int_to_ptr.vmem [resolvable:$true] %s151_s17 }
  0x32   : > { %s140_s28 = scalar_lea.sflag [#allocation6], %s1160_s23  ;;  %s977_s30 = scalar_lea.hbm %s1223_s14, 1024 }
  0x33   : > { %p978_p3 = scmp.ne.s32.totalorder %s1223_s14, %s977_s30  ;;  %s982_s24 = scalar_lea.hbm %s1366_s1, 2048 }
  0x34   : > { %p983_p0 = scmp.lt.u32.totalorder %s1223_s14, %s1366_s1  ;;  %p984_p2 = scmp.lt.u32.totalorder %s982_s24, %s977_s30 }
  0x35   : > { %p980_p8 = pnand %p978_p3, %p949_p1  ;;  %p986_p5 = scmp.lt.u32.totalorder %s977_s30, %s1223_s14 }
  0x36   : > { %p985_p4 = por %p984_p2, %p983_p0 }
  0x37   : > { %p981_p10 = pneg %p980_p8 }
  0x38   : > { %p987_p7 = por %p986_p5, %p985_p4 }
  0x3a   : > { %p988_p9 = pnand %p987_p7, %p981_p10 }
  0x3c   : > { %991 = shalt.err (!%p988_p9)
}
  0x3d   : > { %s992_s25 = scalar_lea.vmem %s1227_s17, 1024  ;;  %s1082_s7 = smov [#allocation5]  }
  0x3e   : > { %p993_p11 = scmp.ne.s32.totalorder %s1227_s17, %s992_s25  ;;  %s997_s8 = sshll.u32 %s1082_s7, 4  ;;  %s998_s8 = int_to_ptr.vmem [resolvable:$false] %s997_s8 }
  0x3f   : > { %s999_s16 = scalar_lea.vmem %s998_s8, 2048  ;;  %p1000_p6 = scmp.lt.s32.totalorder %s1227_s17, %s998_s8 }
  0x40   : > { %p995_p3 = pnand %p993_p11, %p949_p1  ;;  %p1001_p0 = scmp.lt.s32.totalorder %s999_s16, %s992_s25 }
  0x42   : > { %p996_p8 = pneg %p995_p3  ;;  %p1002_p2 = por %p1001_p0, %p1000_p6 }
  0x44   : > { %p1003_p4 = pnand %p1002_p2, %p996_p8 }
  0x46   : > { %1006 = shalt.err (!%p1003_p4)
}
  0x47   : > { %903 = dma.hbm_to_vmem [thread:$0]  (!%p1175_p13), %s1223_s14, 1024, %s1227_s17, %s140_s28, %s1080_s29, %s1080_s29, %s1081_s5  }
  0x48   : > { %163 = sbr.rel (%p1214_p12) target bundleno = 452 (0x1c4), region = 28  ;;  %s1261_s30 = sand.u32 (!%p1214_p12), 1, %s1069_s10  }
  0x49   : > { %s1264_s4 = sshll.u32 (!%p1214_p12), %s1261_s30, 6  ;;  %s166_s3 = scalar_lea.sflag (!%p1214_p12), [#allocation3], %s1261_s30 }
  0x4a   : > { %s1268_s19 = scalar_lea.vmem (!%p1214_p12), [#allocation2], %s1264_s4  ;;  %p1376_p6 = scmp.ne.s32.totalorder (!%p1214_p12), %s1371_s20, 0 }
  0x4f   : > { %1052 = dma.done.wait (%p1376_p6), %s166_s3, 1024  }
  0x50   : > { %1054 = vsyncadd (%p1376_p6), %s166_s3, 4294966272  ;;  %s175_s23 = scalar_lea.sflag [#allocation6], %s1261_s30  ;;  %s1276_s29 = scalar_lea.vmem [#allocation5], %s1264_s4 }
  0x51   : > { %1056 = dma.done.wait (%p1376_p6), %s175_s23, 1024  }
  0x52   : > { %1058 = vsyncadd (%p1376_p6), %s175_s23, 4294966272  ;;  %v217_v0 = vld [vmem:[%s1276_s29 + $0x10] sm:$0xff]  ;;  %v215_v1 = vld [vmem:[%s1276_s29] sm:$0xff]  ;;  %vm255_vm0 = vcmask 130048   ;;  %vm676_vm1 = vcmask 261120   ;;  %s203_s20 = scalar_lea.vmem [#allocation7], %s1264_s4 }
  0x53   : > { %337 = vxpose.xlu1.b32.start [1/2] (short) (narrow) %v217_v0, 16  ;;  %223 = vxpose.xlu0.b32.start [1/2] (short) (narrow) %v215_v1, 16  ;;  %v218_v2 = vld [vmem:[%s1276_s29 + $0x18] sm:$0xff]  ;;  %v216_v3 = vld [vmem:[%s1276_s29 + $0x8] sm:$0xff]  ;;  %v207_v4 = vld [vmem:[%s1268_s19] sm:$0xff]  ;;  %s700_s5 = sshll.u32 %s203_s20, 4  ;;  %s1312_s5 = int_to_ptr.vmem [resolvable:$true] %s700_s5 }
  0x54   : > { %v208_v5 = vld [vmem:[%s1268_s19 + $0x8] sm:$0xff]  ;;  %v209_v6 = vld [vmem:[%s1268_s19 + $0x10] sm:$0xff]  ;;  %v210_v7 = vld [vmem:[%s1268_s19 + $0x18] sm:$0xff]  ;;  %s830_s6 = sshll.u32 %s1122_s13, 10  ;;  %s686_s13 = scalar_lea.sflag [#allocation4], %s1261_s30 }
  0x55   : > { %v875_v8 = vpack.c.bf16 %v208_v5, %v207_v4  ;;  %v879_v9 = vpack.c.bf16 %v210_v7, %v209_v6  ;;  %v221_v10 = vld [vmem:[%s1276_s29 + $0x30] sm:$0xff]  ;;  %v219_v11 = vld [vmem:[%s1276_s29 + $0x20] sm:$0xff]  ;;  %v212_v13 = vld [vmem:[%s1268_s19 + $0x28] sm:$0xff]  ;;  %s1317_s28 = scalar_lea.hbm %s1367_s2, %s830_s6  ;;  %s1007_s24 = scalar_lea.vmem %s1312_s5, 1024 }
  0x56   : > { %v211_v12 = vld [vmem:[%s1268_s19 + $0x20] sm:$0xff]  ;;  %v213_v14 = vld [vmem:[%s1268_s19 + $0x30] sm:$0xff]  ;;  %v214_v16 = vld [vmem:[%s1268_s19 + $0x38] sm:$0xff]  ;;  %p1008_p13 = scmp.ne.s32.totalorder %s1312_s5, %s1007_s24  ;;  %p1377_p1 = scmp.ne.s32.totalorder %s1372_s21, 0 }
  0x57   : > { %338 = vxpose.xlu1.b32.end [2/2] (short) (narrow) %v218_v2, 16  ;;  %224 = vxpose.xlu0.b32.end [2/2] (short) (narrow) %v216_v3, 16  ;;  %v883_v15 = vpack.c.bf16 %v212_v13, %v211_v12  ;;  %v887_v17 = vpack.c.bf16 %v214_v16, %v213_v14  ;;  %v222_v18 = vld [vmem:[%s1276_s29 + $0x38] sm:$0xff]  ;;  %v220_v19 = vld [vmem:[%s1276_s29 + $0x28] sm:$0xff]  ;;  %s1083_s26 = smov [#allocation7]  }
  0x58   : > { %876 = vmatprep.subr.bf16.mxu0 %v875_v8  ;;  %880 = vmatprep.subr.bf16.mxu1 %v879_v9  ;;  %p1009_p12 = pnand %p1008_p13, %p1377_p1  ;;  %s1011_s27 = sshll.u32 %s1083_s26, 4  ;;  %s1012_s27 = int_to_ptr.vmem [resolvable:$false] %s1011_s27 }
  0x59   : > { %878 = vmatpush3.bf16.msra.mxu0 %v875_v8  ;;  %882 = vmatpush3.bf16.msra.mxu1 %v879_v9  ;;  %s1013_s25 = scalar_lea.vmem %s1012_s27, 2048  ;;  %p1014_p5 = scmp.lt.s32.totalorder %s1312_s5, %s1012_s27 }
  0x5a   : > { %884 = vmatprep.subr.bf16.mxu0 %v883_v15  ;;  %888 = vmatprep.subr.bf16.mxu1 %v887_v17  ;;  %p1010_p10 = pneg %p1009_p12  ;;  %p1015_p7 = scmp.lt.s32.totalorder %s1013_s25, %s1007_s24 }
  0x5b   : > { %563 = vxpose.xlu1.b32.start [1/2] (short) (narrow) %v221_v10, 16  ;;  %450 = vxpose.xlu0.b32.start [1/2] (short) (narrow) %v219_v11, 16 }
  0x5c   : > { %p1016_p9 = por %p1015_p7, %p1014_p5 }
  0x5e   : > { %p1017_p11 = pnand %p1016_p9, %p1010_p10 }
  0x5f   : > { %564 = vxpose.xlu1.b32.end [2/2] (short) (narrow) %v222_v18, 16  ;;  %451 = vxpose.xlu0.b32.end [2/2] (short) (narrow) %v220_v19, 16 }
  0xd3   : > { %v353_v20 = vpop.trf.xlu1  ;;  %v239_v21 = vpop.trf.xlu0 }
  0xd4   : > { %851 = vmatprep.mubr.msk.f32.mxu0 %vm255_vm0, %v239_v21  ;;  %858 = vmatprep.mubr.msk.f32.mxu1 %vm255_vm0, %v353_v20 }
  0xd7   : > { %v354_v22 = vpop.trf.xlu1  ;;  %v240_v23 = vpop.trf.xlu0 }
  0xd8   : > { %852 = vmatmul.mubr.msk.f32.vlgmr.msra.gmra.mrb[0].mxu0 %vm255_vm0, %v240_v23  ;;  %859 = vmatmul.mubr.msk.f32.vlgmr.msra.gmra.mrb[0].mxu1 %vm255_vm0, %v354_v22 }
  0xd9   : > { %886 = vmatpush3.bf16.msra.mxu0 %v883_v15  ;;  %890 = vmatpush3.bf16.msra.mxu1 %v887_v17 }
  0xdb   : > { %v579_v24 = vpop.trf.xlu1  ;;  %v466_v25 = vpop.trf.xlu0 }
  0xdc   : > { %865 = vmatprep.mubr.msk.f32.mxu0 %vm255_vm0, %v466_v25  ;;  %872 = vmatprep.mubr.msk.f32.mxu1 %vm255_vm0, %v579_v24 }
  0xdf   : > { %v580_v26 = vpop.trf.xlu1  ;;  %v467_v27 = vpop.trf.xlu0 }
  0xe0   : > { %866 = vmatmul.mubr.msk.f32.vlgmr.msra.gmra.mrb[2].mxu0 %vm255_vm0, %v467_v27  ;;  %873 = vmatmul.mubr.msk.f32.vlgmr.msra.gmra.mrb[2].mxu1 %vm255_vm0, %v580_v26 }
 0x1ab   : > { %v853_v28 = vpop.f32.mrb[0].mxu0  ;;  %v860_v29 = vpop.f32.mrb[0].mxu1 }
 0x1ac   : > { %678 = vst.msk [vmem:[%s203_s20 + $0x8] sm:$0xff] %vm676_vm1, %v853_v28  ;;  %680 = vst.msk [vmem:[%s203_s20 + $0x18] sm:$0xff] %vm676_vm1, %v860_v29  ;;  %v328_v30 = vpop.f32.mrb[1].mxu0  ;;  %v441_v31 = vpop.f32.mrb[1].mxu1 }
 0x1ad   : > { %677 = vst.msk [vmem:[%s203_s20] sm:$0xff] %vm676_vm1, %v328_v30  ;;  %679 = vst.msk [vmem:[%s203_s20 + $0x10] sm:$0xff] %vm676_vm1, %v441_v31 }
 0x1b3   : > { %v867_v32 = vpop.f32.mrb[2].mxu0  ;;  %v874_v33 = vpop.f32.mrb[2].mxu1 }
 0x1b4   : > { %682 = vst.msk [vmem:[%s203_s20 + $0x28] sm:$0xff] %vm676_vm1, %v867_v32  ;;  %684 = vst.msk [vmem:[%s203_s20 + $0x38] sm:$0xff] %vm676_vm1, %v874_v33  ;;  %v554_v34 = vpop.f32.mrb[3].mxu0  ;;  %v667_v35 = vpop.f32.mrb[3].mxu1 }
 0x1b5   : > { %681 = vst.msk [vmem:[%s203_s20 + $0x20] sm:$0xff] %vm676_vm1, %v554_v34  ;;  %683 = vst.msk [vmem:[%s203_s20 + $0x30] sm:$0xff] %vm676_vm1, %v667_v35 }
 0x1b6   : > { %1020 = shalt.err (!%p1017_p11)
}
 0x1b7   : > { %s1021_s7 = scalar_lea.hbm %s1317_s28, 1024  ;;  %s1025_s4 = scalar_lea.hbm %s1367_s2, 2048 }
 0x1b8   : > { %p1022_p3 = scmp.ne.s32.totalorder %s1317_s28, %s1021_s7  ;;  %p1026_p2 = scmp.lt.u32.totalorder %s1317_s28, %s1367_s2 }
 0x1b9   : > { %p1027_p4 = scmp.lt.u32.totalorder %s1025_s4, %s1021_s7  ;;  %p1029_p13 = scmp.lt.u32.totalorder %s1021_s7, %s1317_s28 }
 0x1ba   : > { %p1023_p8 = pnand %p1022_p3, %p1377_p1 }
 0x1bb   : > { %p1028_p6 = por %p1027_p4, %p1026_p2 }
 0x1bc   : > { %p1024_p0 = pneg %p1023_p8 }
 0x1bd   : > { %p1030_p12 = por %p1029_p13, %p1028_p6 }
 0x1bf   : > { %p1031_p10 = pnand %p1030_p12, %p1024_p0 }
 0x1c1   : > { %1034 = shalt.err (!%p1031_p10)
}
 0x1c2   : > { %s1084_s23 = smov 128   ;;  %s1085_s29 = smov 8  }
 0x1c3   : > { %895 = dma.vmem_to_hbm [thread:$0]  (%p1377_p1), %s1312_s5, 1024, %s1317_s28, %s686_s13, %s1084_s23, %s1084_s23, %s1085_s29  }
 0x1c4 PF: > { %s715_s20 = sand.u32 1, %s1065_s9   ;;  %p1378_p5 = scmp.ne.s32.totalorder %s1373_s22, 0 }
 0x1c5   : > { %p1379_p7 = scmp.ge.s32.totalorder %s1077_s12, 2  ;;  %s716_s6 = scalar_lea.sflag [#allocation4], %s715_s20 }
 0x1c7   : > { %p905_p9 = pnand %p1379_p7, %p1378_p5 }
 0x1c9   : > { %1060 = dma.done.wait (!%p905_p9), %s716_s6, 1024  }
 0x1ca   : > { %1062 = vsyncadd (!%p905_p9), %s716_s6, 4294966272  ;;  %p18_p11 = scmp.ge.s32.totalorder %s1126_s15, 4   ;;  %s1380_s9 = smov %s1069_s10 }
 0x1cb   : > { %s1381_s10 = smov %s1073_s11  ;;  %s1382_s11 = smov %s1138_s18 }
 0x1cc   : > { %s1383_s12 = smov %s1126_s15  ;;  %20 = sbr.rel (!%p18_p11) target bundleno = 7 (0x7), region = 86 }
 0x1d3   :  { %721 = vsyncpa [#allocation3], 1 }
 0x1d4   :  { %723 = vsyncpa [#allocation3 + $0x1], 1 }
 0x1d5   :  { %724 = vsyncpa [#allocation6], 1 }
 0x1d6   :  { %726 = vsyncpa [#allocation6 + $0x1], 1 }
 0x1d7   :  { %727 = vsyncpa [#allocation4], 1 }
 0x1d8   :  { %729 = vsyncpa [#allocation4 + $0x1], 1 }

</bundles_post_ra>
